<compile_context>
chip_gen: v7x
topology: tpu7x:2x2x1
jax: 0.10.0
libtpu: 0.0.40
codegen_flags: <defaults>
</compile_context>

<pallas_src>
import math

import jax
import jax.numpy as jnp
from jax.experimental import pallas as pl
from jax.experimental.pallas import tpu as pltpu

# ----- module parameters (torchBirefringentWindow defaults, small N_pts) -----
APERTURE_SIZE = 1.0
COMPUTATION_SIZE = 4.0
N_PTS = 32                                      # small demo size (default is 128)
STEP_F = COMPUTATION_SIZE / N_PTS
UMAX = 1.0
N_GRID = int(math.ceil((2.0 * UMAX) / STEP_F))  # len(arange(-1, 1, step_f)) = 16

# Deterministic birefringent-window parameters (would be learnable scalars).
C_RET = 1.24 * math.pi
PHI_OFF = math.pi / 2.0


# --------------------------------------------------------------------------
# Fused kernel: build the Jones pupil in-register and apply it to the
# interleaved complex 2x2 blocks.  x_ref / o_ref: f32 (row_block, 8n) with
# lane = 8*col + 4*k + 2*b + c  (c: 0=re, 1=im).
# Jones matrix per pixel: J = [[p + iq, ir], [ir, p - iq]].
# --------------------------------------------------------------------------
def _bw_fused_kernel(x_ref, o_ref):
    rows, L = x_ref.shape
    r0 = pl.program_id(0) * rows

    row = jax.lax.broadcasted_iota(jnp.int32, (rows, L), 0) + r0   # mesh row i
    lane = jax.lax.broadcasted_iota(jnp.int32, (rows, L), 1)
    col = lane >> 3                      # mesh column j (8 lanes per pixel)
    off = lane & 7                       # position inside the 2x2 complex block
    a_bit = (off >> 2) & 1               # output row a of the 2x2 block
    c_bit = off & 1                      # 0 = real lane, 1 = imag lane

    # ---- Jones pupil, built in-register (input independent, cheap) --------
    # torchPupil.xy_mesh: ux[i,j] = u[j], uy[i,j] = -u[i], u = arange(-1,1,step)
    ux = STEP_F * col.astype(jnp.float32) - UMAX
    uy = UMAX - STEP_F * row.astype(jnp.float32)
    ur2 = ux * ux + uy * uy
    # cos/sin(2*uphi) without atan2; center pixel irrelevant since B=sin(0)=0.
    # approx=False kept: one-time-per-lane cost, protects the 1e-5 tolerance.
    inv = pl.reciprocal(jnp.where(ur2 > 0.0, ur2, 1.0), approx=False)
    c2p = (ux * ux - uy * uy) * inv
    s2p = (2.0 * ux * uy) * inv
    A = jnp.cos((0.5 * C_RET) * ur2)
    B = jnp.sin((0.5 * C_RET) * ur2)
    ap = (ur2 <= APERTURE_SIZE * APERTURE_SIZE).astype(jnp.float32)
    # theta = uphi + PHI_OFF, 2*PHI_OFF = pi folded: cos(2t)=-c2p, sin(2t)=-s2p
    p = ap * A                           # Re(J00) =  Re(J11)
    q = ap * (B * (-c2p))                # Im(J00) = -Im(J11)
    r = ap * (B * (-s2p))                # Im(J01) =  Im(J10)

    # ---- apply J to the interleaved 2x2 complex blocks --------------------
    x = x_ref[...]
    # swap re <-> im inside each complex pair (only in-pixel lanes selected,
    # so the roll wrap-around is never used)
    xp = jnp.where(c_bit == 0,
                   pltpu.roll(x, L - 1, axis=1),    # X[m+1]
                   pltpu.roll(x, 1, axis=1))        # X[m-1]
    # additionally swap the two input rows (k) of the 2x2 block
    xkp = jnp.where(a_bit == 0,
                    pltpu.roll(xp, L - 4, axis=1),  # Xp[m+4]
                    pltpu.roll(xp, 4, axis=1))      # Xp[m-4]

    # sign patterns of the q and i*r terms, folded into the pupil values
    qs = jnp.where((a_bit ^ c_bit) == 1, q, -q)
    rs = jnp.where(c_bit == 1, r, -r)

    o_ref[...] = p * x + qs * xp + rs * xkp


# --------------------------------------------------------------------------
# Wrapper: thin, contiguous layout plumbing only (no transposes, no pad).
# --------------------------------------------------------------------------
@jax.jit
def birefringent_window_forward(x):
    """x: complex [n, n, 2, 2]  ->  complex64 [n, n, 2, 2]  (pupil @ x)."""
    n = x.shape[0]
    L = 8 * n

    # Interleaved lane-dense planar view: lane = 8*j + 4*k + 2*b + c.
    xf = jnp.stack([jnp.real(x), jnp.imag(x)], axis=-1).astype(jnp.float32)
    xf = xf.reshape(n, L)

    # Row tile: whole mesh when small; otherwise split so each plane tile stays
    # ~512 KiB (v7x VMEM / vreg pressure) and the parallel grid can pipeline
    # DMA with compute and use both v7x TensorCores.
    row_block = n
    max_rows = max(8, (1 << 19) // (L * 4))
    while row_block > max_rows and row_block % 16 == 0:
        row_block //= 2

    cost = pl.CostEstimate(flops=30 * n * L,
                           transcendentals=3 * n * L,
                           bytes_accessed=8 * n * L)
    y = pl.pallas_call(
        _bw_fused_kernel,
        out_shape=jax.ShapeDtypeStruct((n, L), jnp.float32),
        grid=(n // row_block,),
        in_specs=[pl.BlockSpec((row_block, L), lambda i: (i, 0))],
        out_specs=pl.BlockSpec((row_block, L), lambda i: (i, 0)),
        compiler_params=pltpu.CompilerParams(
            dimension_semantics=("parallel",)),
        cost_estimate=cost,
    )(xf)

    y = y.reshape(n, n, 2, 2, 2)
    return jax.lax.complex(y[..., 0], y[..., 1])


# --------------------------------------------------------------------------
# Pure-JAX reference mirroring the torch semantics.
# --------------------------------------------------------------------------
def _ref_forward(x):
    u = jnp.arange(-UMAX, UMAX, STEP_F, dtype=jnp.float32)
    ux, uy = jnp.meshgrid(u, u, indexing='xy')
    uy = -uy
    ur2 = ux * ux + uy * uy
    uphi = jnp.arctan2(uy, ux)
    theta = uphi + PHI_OFF
    delta = C_RET * ur2
    A = jnp.cos(0.5 * delta)
    B = jnp.sin(0.5 * delta)
    J00 = A + 1j * B * jnp.cos(2.0 * theta)
    J01 = 1j * B * jnp.sin(2.0 * theta)
    J11 = A - 1j * B * jnp.cos(2.0 * theta)
    ap = (ur2 <= APERTURE_SIZE * APERTURE_SIZE)
    J = jnp.stack(
        [jnp.stack([J00, J01], axis=-1), jnp.stack([J01, J11], axis=-1)],
        axis=-2) * ap[..., None, None]
    return (J.astype(jnp.complex64) @ x).astype(jnp.complex64)


if __name__ == "__main__":
    key = jax.random.PRNGKey(0)
    k1, k2 = jax.random.split(key)
    n = N_GRID  # 16
    xr = jax.random.normal(k1, (n, n, 2, 2), dtype=jnp.float32)
    xi = jax.random.normal(k2, (n, n, 2, 2), dtype=jnp.float32)
    x = (xr + 1j * xi).astype(jnp.complex64)

    out = jax.block_until_ready(birefringent_window_forward(x))

    ref = _ref_forward(x)
    assert out.shape == (n, n, 2, 2) and out.dtype == jnp.complex64
    assert jnp.allclose(out, ref, atol=1e-5, rtol=1e-5), "mismatch vs reference"
    print("KERNEL_OK")
</pallas_src>

<mosaic_0001>
module attributes {stable_mosaic.version = 11 : i64} {
  func.func @_bw_fused_kernel(%arg0: i32, %arg1: memref<16x128xf32, #tpu.memory_space<vmem>>, %arg2: memref<16x128xf32, #tpu.memory_space<vmem>>) attributes {dimension_semantics = [#tpu.dimension_semantics<parallel>], iteration_bounds = array<i64: 1>, scalar_prefetch = 0 : i64, scratch_operands = 0 : i64, tpu.core_type = #tpu.core_type<tc>, window_params = [{transform_indices = @transform_0, window_bounds = array<i64: 16, 128>}, {transform_indices = @transform_1, window_bounds = array<i64: 16, 128>}]} {
    %c16_i32 = arith.constant 16 : i32
    %0 = arith.muli %arg0, %c16_i32 : i32
    %1 = tpu.iota {dimensions = array<i32: 0>} : vector<16x128xi32>
    %2 = vector.broadcast %0 : i32 to vector<16x128xi32>
    %3 = arith.addi %1, %2 : vector<16x128xi32>
    %4 = tpu.iota {dimensions = array<i32: 1>} : vector<16x128xi32>
    %c3_i32 = arith.constant 3 : i32
    %5 = vector.broadcast %c3_i32 : i32 to vector<16x128xi32>
    %6 = arith.shrsi %4, %5 : vector<16x128xi32>
    %c7_i32 = arith.constant 7 : i32
    %7 = vector.broadcast %c7_i32 : i32 to vector<16x128xi32>
    %8 = arith.andi %4, %7 : vector<16x128xi32>
    %c2_i32 = arith.constant 2 : i32
    %9 = vector.broadcast %c2_i32 : i32 to vector<16x128xi32>
    %10 = arith.shrsi %8, %9 : vector<16x128xi32>
    %c1_i32 = arith.constant 1 : i32
    %11 = vector.broadcast %c1_i32 : i32 to vector<16x128xi32>
    %12 = arith.andi %10, %11 : vector<16x128xi32>
    %c1_i32_0 = arith.constant 1 : i32
    %13 = vector.broadcast %c1_i32_0 : i32 to vector<16x128xi32>
    %14 = arith.andi %8, %13 : vector<16x128xi32>
    %15 = arith.sitofp %6 : vector<16x128xi32> to vector<16x128xf32>
    %cst = arith.constant 1.250000e-01 : f32
    %16 = vector.broadcast %cst : f32 to vector<16x128xf32>
    %17 = arith.mulf %16, %15 : vector<16x128xf32>
    %cst_1 = arith.constant 1.000000e+00 : f32
    %18 = vector.broadcast %cst_1 : f32 to vector<16x128xf32>
    %19 = arith.subf %17, %18 : vector<16x128xf32>
    %20 = arith.sitofp %3 : vector<16x128xi32> to vector<16x128xf32>
    %cst_2 = arith.constant 1.250000e-01 : f32
    %21 = vector.broadcast %cst_2 : f32 to vector<16x128xf32>
    %22 = arith.mulf %21, %20 : vector<16x128xf32>
    %cst_3 = arith.constant 1.000000e+00 : f32
    %23 = vector.broadcast %cst_3 : f32 to vector<16x128xf32>
    %24 = arith.subf %23, %22 : vector<16x128xf32>
    %25 = arith.mulf %19, %19 : vector<16x128xf32>
    %26 = arith.mulf %24, %24 : vector<16x128xf32>
    %27 = arith.addf %25, %26 : vector<16x128xf32>
    %cst_4 = arith.constant 0.000000e+00 : f32
    %28 = vector.broadcast %cst_4 : f32 to vector<16x128xf32>
    %29 = arith.cmpf ogt, %27, %28 : vector<16x128xf32>
    %cst_5 = arith.constant 1.000000e+00 : f32
    %30 = vector.broadcast %cst_5 : f32 to vector<16x128xf32>
    %31 = arith.select %29, %27, %30 : vector<16x128xi1>, vector<16x128xf32>
    %32 = tpu.reciprocal %31 : vector<16x128xf32> -> vector<16x128xf32>
    %33 = arith.mulf %19, %19 : vector<16x128xf32>
    %34 = arith.mulf %24, %24 : vector<16x128xf32>
    %35 = arith.subf %33, %34 : vector<16x128xf32>
    %36 = arith.mulf %35, %32 : vector<16x128xf32>
    %cst_6 = arith.constant 2.000000e+00 : f32
    %37 = vector.broadcast %cst_6 : f32 to vector<16x128xf32>
    %38 = arith.mulf %37, %19 : vector<16x128xf32>
    %39 = arith.mulf %38, %24 : vector<16x128xf32>
    %40 = arith.mulf %39, %32 : vector<16x128xf32>
    %cst_7 = arith.constant 1.9477874 : f32
    %41 = vector.broadcast %cst_7 : f32 to vector<16x128xf32>
    %42 = arith.mulf %41, %27 : vector<16x128xf32>
    %43 = math.cos %42 : vector<16x128xf32>
    %cst_8 = arith.constant 1.9477874 : f32
    %44 = vector.broadcast %cst_8 : f32 to vector<16x128xf32>
    %45 = arith.mulf %44, %27 : vector<16x128xf32>
    %46 = math.sin %45 : vector<16x128xf32>
    %cst_9 = arith.constant 1.000000e+00 : f32
    %47 = vector.broadcast %cst_9 : f32 to vector<16x128xf32>
    %48 = arith.cmpf ole, %27, %47 : vector<16x128xf32>
    %49 = arith.extui %48 : vector<16x128xi1> to vector<16x128xi32>
    %50 = arith.sitofp %49 : vector<16x128xi32> to vector<16x128xf32>
    %51 = arith.mulf %50, %43 : vector<16x128xf32>
    %cst_10 = arith.constant 0.000000e+00 : f32
    %52 = vector.broadcast %cst_10 : f32 to vector<16x128xf32>
    %53 = arith.subf %52, %36 : vector<16x128xf32>
    %54 = arith.mulf %46, %53 : vector<16x128xf32>
    %55 = arith.mulf %50, %54 : vector<16x128xf32>
    %cst_11 = arith.constant 0.000000e+00 : f32
    %56 = vector.broadcast %cst_11 : f32 to vector<16x128xf32>
    %57 = arith.subf %56, %40 : vector<16x128xf32>
    %58 = arith.mulf %46, %57 : vector<16x128xf32>
    %59 = arith.mulf %50, %58 : vector<16x128xf32>
    %c0 = arith.constant 0 : index
    %c0_12 = arith.constant 0 : index
    %60 = vector.load %arg1[%c0, %c0_12] : memref<16x128xf32, #tpu.memory_space<vmem>>, vector<16x128xf32>
    %c0_i32 = arith.constant 0 : i32
    %61 = vector.broadcast %c0_i32 : i32 to vector<16x128xi32>
    %62 = arith.cmpi eq, %14, %61 : vector<16x128xi32>
    %c127_i32 = arith.constant 127 : i32
    %63 = tpu.dynamic_rotate %60 by %c127_i32 dim 1 : vector<16x128xf32>, i32 -> vector<16x128xf32>
    %c1_i32_13 = arith.constant 1 : i32
    %64 = tpu.dynamic_rotate %60 by %c1_i32_13 dim 1 : vector<16x128xf32>, i32 -> vector<16x128xf32>
    %65 = arith.select %62, %63, %64 : vector<16x128xi1>, vector<16x128xf32>
    %c0_i32_14 = arith.constant 0 : i32
    %66 = vector.broadcast %c0_i32_14 : i32 to vector<16x128xi32>
    %67 = arith.cmpi eq, %12, %66 : vector<16x128xi32>
    %c124_i32 = arith.constant 124 : i32
    %68 = tpu.dynamic_rotate %65 by %c124_i32 dim 1 : vector<16x128xf32>, i32 -> vector<16x128xf32>
    %c4_i32 = arith.constant 4 : i32
    %69 = tpu.dynamic_rotate %65 by %c4_i32 dim 1 : vector<16x128xf32>, i32 -> vector<16x128xf32>
    %70 = arith.select %67, %68, %69 : vector<16x128xi1>, vector<16x128xf32>
    %71 = arith.xori %12, %14 : vector<16x128xi32>
    %c1_i32_15 = arith.constant 1 : i32
    %72 = vector.broadcast %c1_i32_15 : i32 to vector<16x128xi32>
    %73 = arith.cmpi eq, %71, %72 : vector<16x128xi32>
    %cst_16 = arith.constant 0.000000e+00 : f32
    %74 = vector.broadcast %cst_16 : f32 to vector<16x128xf32>
    %75 = arith.subf %74, %55 : vector<16x128xf32>
    %76 = arith.select %73, %55, %75 : vector<16x128xi1>, vector<16x128xf32>
    %c1_i32_17 = arith.constant 1 : i32
    %77 = vector.broadcast %c1_i32_17 : i32 to vector<16x128xi32>
    %78 = arith.cmpi eq, %14, %77 : vector<16x128xi32>
    %cst_18 = arith.constant 0.000000e+00 : f32
    %79 = vector.broadcast %cst_18 : f32 to vector<16x128xf32>
    %80 = arith.subf %79, %59 : vector<16x128xf32>
    %81 = arith.select %78, %59, %80 : vector<16x128xi1>, vector<16x128xf32>
    %82 = arith.mulf %51, %60 : vector<16x128xf32>
    %83 = arith.mulf %76, %65 : vector<16x128xf32>
    %84 = arith.addf %82, %83 : vector<16x128xf32>
    %85 = arith.mulf %81, %70 : vector<16x128xf32>
    %86 = arith.addf %84, %85 : vector<16x128xf32>
    %c0_19 = arith.constant 0 : index
    %c0_20 = arith.constant 0 : index
    %87 = vector.load %arg2[%c0_19, %c0_20] : memref<16x128xf32, #tpu.memory_space<vmem>>, vector<16x128xf32>
    tpu.vector_store %arg2[%c0_19, %c0_20], %86 {strides = array<i32>} : memref<16x128xf32, #tpu.memory_space<vmem>>, vector<16x128xf32>,
    return
  }
  func.func @transform_0(%arg0: i32) -> (i32, i32) {
    %c0_i32 = arith.constant 0 : i32
    %c0_i32_0 = arith.constant 0 : i32
    return %arg0, %c0_i32 : i32, i32
  }
  func.func @transform_1(%arg0: i32) -> (i32, i32) {
    %c0_i32 = arith.constant 0 : i32
    %c0_i32_0 = arith.constant 0 : i32
    return %arg0, %c0_i32 : i32, i32
  }
}

</mosaic_0001>

<bundles_post_ra>
// kernel: custom-call
= control target key start
LH: loop header
LB: loop body
LE: loop exit
PB: predicated region body
PF: predicated region fallthrough
CT: control target
= control target key end

     0   :  { %2 = vsyncpa [#allocation0], 0  ;;  %s61_s0 = inlined_call_operand.hbm [shape: c64[16,16,2,2], index: 0, kind: input, shape index: {}]   ;;  %s62_s1 = inlined_call_operand.vmem [shape: f32[16,16,2,2], index: 1, kind: output, shape index: {}]  }
   0x1   :  { %s3_s8 = sshll.u32 %s62_s1, 4  ;;  %s9_s11 = scalar_lea.hbm %s61_s0, 1024  ;;  %s4_s8 = int_to_ptr.vmem [resolvable:$true] %s3_s8 }
   0x2   :  { %p10_p0 = scmp.ne.s32.totalorder %s61_s0, %s9_s11  ;;  %s11_s16 = scalar_lea.hbm %s61_s0, 2048 }
   0x3   :  { %p12_p1 = scmp.lt.u32.totalorder %s11_s16, %s9_s11  ;;  %p13_p2 = scmp.lt.u32.totalorder %s9_s11, %s61_s0 }
   0x5   :  { %p14_p3 = por %p13_p2, %p12_p1 }
   0x7   :  { %p15_p4 = pnand %p14_p3, %p10_p0 }
   0x9   :  { %18 = shalt.err (!%p15_p4)  }
   0xa   :  { %s19_s1 = scalar_lea.vmem %s4_s8, 1024  ;;  %p24_p6 = scmp.lt.s32.totalorder %s4_s8, %s4_s8 }
   0xb   :  { %p20_p5 = scmp.ne.s32.totalorder %s4_s8, %s19_s1  ;;  %p25_p7 = scmp.lt.s32.totalorder %s19_s1, %s19_s1 }
   0xd   :  { %p26_p8 = por %p25_p7, %p24_p6 }
   0xf   :  { %p27_p9 = pnand %p26_p8, %p20_p5 }
  0x11   :  { %30 = shalt.err (!%p27_p9)  }
  0x12   :  { %6 = dma.hbm_to_vmem [thread:$0]  %s61_s0, 1024, %s4_s8, [#allocation0] }
  0x13   :  { %31 = dma.done.wait [#allocation0], 1024  }
  0x14   :  { %32 = vsyncadd [#allocation0], 4294966272 }
  0x15   :  { %8 = vsyncpa [#allocation0], 1 }

// kernel: custom-call.1
= control target key start
LH: loop header
LB: loop body
LE: loop exit
PB: predicated region body
PF: predicated region fallthrough
CT: control target
= control target key end

     0   :  { %s59_s0 = inlined_call_operand.hbm [shape: c64[16,16,2,2], index: 0, kind: input, shape index: {}]   ;;  %s60_s1 = inlined_call_operand.vmem [shape: f32[16,16,2,2], index: 1, kind: output, shape index: {}]  }
   0x1   :  { %s2_s8 = scalar_lea.hbm %s59_s0, 1024 }
   0x2   :  { %3 = vsyncpa [#allocation0], 0  ;;  %s4_s11 = sshll.u32 %s60_s1, 4  ;;  %s34_s14 = scalar_lea.hbm %s59_s0, 2048  ;;  %s5_s11 = int_to_ptr.vmem [resolvable:$true] %s4_s11 }
   0x3   :  { %p11_p0 = scmp.ne.s32.totalorder %s2_s8, %s34_s14  ;;  %p13_p1 = scmp.lt.u32.totalorder %s2_s8, %s59_s0 }
   0x4   :  { %p14_p2 = scmp.lt.u32.totalorder %s34_s14, %s34_s14  ;;  %p16_p4 = scmp.lt.u32.totalorder %s34_s14, %s2_s8 }
   0x6   :  { %p15_p3 = por %p14_p2, %p13_p1 }
   0x8   :  { %p17_p5 = por %p16_p4, %p15_p3 }
   0xa   :  { %p18_p6 = pnand %p17_p5, %p11_p0 }
   0xc   :  { %21 = shalt.err (!%p18_p6)  }
   0xd   :  { %s22_s17 = scalar_lea.vmem %s5_s11, 1024  ;;  %p27_p8 = scmp.lt.s32.totalorder %s5_s11, %s5_s11 }
   0xe   :  { %p23_p7 = scmp.ne.s32.totalorder %s5_s11, %s22_s17  ;;  %p28_p9 = scmp.lt.s32.totalorder %s22_s17, %s22_s17 }
  0x10   :  { %p29_p10 = por %p28_p9, %p27_p8 }
  0x12   :  { %p30_p11 = pnand %p29_p10, %p23_p7 }
  0x14   :  { %33 = shalt.err (!%p30_p11)  }
  0x15   :  { %7 = dma.hbm_to_vmem [thread:$0]  %s2_s8, 1024, %s5_s11, [#allocation0] }
  0x16   :  { %35 = dma.done.wait [#allocation0], 1024  }
  0x17   :  { %36 = vsyncadd [#allocation0], 4294966272 }
  0x18   :  { %9 = vsyncpa [#allocation0], 1 }

// kernel: custom-call.2
= control target key start
LH: loop header
LB: loop body
LE: loop exit
PB: predicated region body
PF: predicated region fallthrough
CT: control target
= control target key end

     0   :  { %s212_s0 = inlined_call_operand.vmem [shape: f32[16,16,2,2], index: 0, kind: input, shape index: {}]   ;;  %s213_s1 = inlined_call_operand.vmem [shape: f32[16,16,2,2], index: 1, kind: input, shape index: {}]   ;;  %s214_s2 = inlined_call_operand.vmem [shape: c64[16,16,2,2], index: 2, kind: output, shape index: {}]  }
   0x1   :  { %v5_v0 = vld [vmem:[%s212_s0] sm:$0xff]  ;;  %v72_v1 = vld [vmem:[%s212_s0 + $0x8] sm:$0xff]  ;;  %v74_v2 = vld [vmem:[%s212_s0 + $0x10] sm:$0xff] }
   0x2   :  { %6 = vst [vmem:[%s214_s2] sm:$0xff] %v5_v0  ;;  %73 = vst [vmem:[%s214_s2 + $0x8] sm:$0xff] %v72_v1  ;;  %v76_v3 = vld [vmem:[%s212_s0 + $0x18] sm:$0xff]  ;;  %v78_v4 = vld [vmem:[%s212_s0 + $0x20] sm:$0xff] }
   0x3   :  { %75 = vst [vmem:[%s214_s2 + $0x10] sm:$0xff] %v74_v2  ;;  %v80_v5 = vld [vmem:[%s212_s0 + $0x28] sm:$0xff]  ;;  %77 = vst [vmem:[%s214_s2 + $0x18] sm:$0xff] %v76_v3  ;;  %v82_v6 = vld [vmem:[%s212_s0 + $0x30] sm:$0xff] }
   0x4   :  { %79 = vst [vmem:[%s214_s2 + $0x20] sm:$0xff] %v78_v4  ;;  %81 = vst [vmem:[%s214_s2 + $0x28] sm:$0xff] %v80_v5  ;;  %v84_v7 = vld [vmem:[%s212_s0 + $0x38] sm:$0xff]  ;;  %v35_v8 = vld [vmem:[%s213_s1] sm:$0xff] }
   0x5   :  { %83 = vst [vmem:[%s214_s2 + $0x30] sm:$0xff] %v82_v6  ;;  %85 = vst [vmem:[%s214_s2 + $0x38] sm:$0xff] %v84_v7  ;;  %v87_v9 = vld [vmem:[%s213_s1 + $0x8] sm:$0xff]  ;;  %v89_v10 = vld [vmem:[%s213_s1 + $0x10] sm:$0xff] }
   0x6   :  { %86 = vst [vmem:[%s214_s2 + $0x40] sm:$0xff] %v35_v8  ;;  %v91_v11 = vld [vmem:[%s213_s1 + $0x18] sm:$0xff]  ;;  %88 = vst [vmem:[%s214_s2 + $0x48] sm:$0xff] %v87_v9  ;;  %v93_v12 = vld [vmem:[%s213_s1 + $0x20] sm:$0xff] }
   0x7   :  { %90 = vst [vmem:[%s214_s2 + $0x50] sm:$0xff] %v89_v10  ;;  %92 = vst [vmem:[%s214_s2 + $0x58] sm:$0xff] %v91_v11  ;;  %v95_v13 = vld [vmem:[%s213_s1 + $0x28] sm:$0xff]  ;;  %v97_v14 = vld [vmem:[%s213_s1 + $0x30] sm:$0xff] }
   0x8   :  { %94 = vst [vmem:[%s214_s2 + $0x60] sm:$0xff] %v93_v12  ;;  %96 = vst [vmem:[%s214_s2 + $0x68] sm:$0xff] %v95_v13  ;;  %v99_v15 = vld [vmem:[%s213_s1 + $0x38] sm:$0xff] }
   0x9   :  { %98 = vst [vmem:[%s214_s2 + $0x70] sm:$0xff] %v97_v14  ;;  %100 = vst [vmem:[%s214_s2 + $0x78] sm:$0xff] %v99_v15 }

// kernel: birefringent_window_forward.1
= control target key start
LH: loop header
LB: loop body
LE: loop exit
PB: predicated region body
PF: predicated region fallthrough
CT: control target
= control target key end

     0   :  { %v9_v0 = vlaneseq  ;;  %s588_s8 = smov 1   ;;  %s589_s9 = smov 127   ;;  %v590_v51 = vmov 683565275   ;;  %v591_v53 = vmov 2475754826   ;;  %s753_s0 = inlined_call_operand.vmem [shape: f32[16,128], index: 0, kind: input, shape index: {}]   ;;  %s754_s1 = inlined_call_operand.vmem [shape: f32[16,128], index: 1, kind: output, shape index: {}]  }
   0x1   :  { %v614_v3 = vld [vmem:[%s753_s0] sm:$0xff]  ;;  %v622_v7 = vld [vmem:[%s753_s0 + $0x8] sm:$0xff]  ;;  %v592_v55 = vmov 2131351028   ;;  %v593_v57 = vmov 2102212464  }
   0x2   :  { %v10_v1 = vshrl.u32 %v9_v0, 7  ;;  %v609_v2 = vand.u32 127, %v9_v0  ;;  %494 = vrot.lane.b32.xlu1 %v614_v3, %s588_s8  ;;  %490 = vrot.lane.b32.xlu0 %v614_v3, %s589_s9  ;;  %v594_v59 = vmov 920167782   ;;  %s597_s0 = smov 124   ;;  %s598_s12 = smov 4  }
   0x4   :  { %v17_v4 = vshra.s32 %v609_v2, 3  ;;  %v25_v5 = vcvt.s32.f32 %v10_v1  ;;  %v11_v6 = vadd.s32 8, %v10_v1 }
   0x6   :  { %v22_v8 = vcvt.s32.f32 %v17_v4  ;;  %v27_v9 = vmul.f32 0.125, %v25_v5  ;;  %v26_v10 = vcvt.s32.f32 %v11_v6  ;;  %496 = vrot.lane.b32.xlu1 %v622_v7, %s588_s8  ;;  %492 = vrot.lane.b32.xlu0 %v622_v7, %s589_s9 }
   0x8   :  { %v23_v11 = vmul.f32 0.125, %v22_v8  ;;  %v29_v12 = vsub.f32 1.0, %v27_v9  ;;  %v28_v13 = vmul.f32 0.125, %v26_v10  ;;  %v595_v8 = vmov 1326507024  }
   0xa   :  { %v538_v14 = vadd.f32 -1.0, %v23_v11  ;;  %v32_v15 = vmul.f32 %v29_v12, %v29_v12  ;;  %v30_v16 = vsub.f32 1.0, %v28_v13 }
   0xc   :  { %v626_v17 = vmul.f32 %v538_v14, %v538_v14  ;;  %v46_v18 = vmul.f32 2.0, %v538_v14  ;;  %v628_v19 = vmul.f32 %v30_v16, %v30_v16 }
   0xe   :  { %v631_v20 = vadd.f32 %v32_v15, %v626_v17  ;;  %v42_v21 = vsub.f32 %v626_v17, %v32_v15  ;;  %v47_v22 = vmul.f32 %v46_v18, %v29_v12  ;;  %v636_v23 = vadd.f32 %v628_v19, %v626_v17 }
   0xf   :  { %v43_v24 = vsub.f32 %v626_v17, %v628_v19  ;;  %v640_v25 = vmul.f32 %v46_v18, %v30_v16 }
  0x10   :  { %vm36_vm0 = vcmp.gt.f32.partialorder %v631_v20, 0.0  ;;  %v644_v26 = vmul.f32 1.9477874, %v631_v20  ;;  %vm37_vm1 = vcmp.gt.f32.partialorder %v636_v23, 0.0  ;;  %v649_v28 = vmul.f32 1.9477874, %v636_v23 }
  0x11   :  { %v38_v27 = vsel %vm36_vm0, %v631_v20, 1.0  ;;  %v39_v31 = vsel %vm37_vm1, %v636_v23, 1.0 }
  0x12   :  { %576 = vrcp.f32 %v38_v27  ;;  %v56_v29 = vand.u32 2139095040, %v644_v26  ;;  %v53_v30 = vand.u32 2147483647, %v644_v26  ;;  %v159_v33 = vand.u32 2139095040, %v649_v28 }
  0x13   :  { %v156_v34 = vand.u32 2147483647, %v649_v28  ;;  %578 = vrcp.f32 %v39_v31  ;;  %vm55_vm0 = vcmp.lt.s32.totalorder %v644_v26, 0 }
  0x14   :  { %v57_v32 = vshrl.u32 %v56_v29, 23  ;;  %v160_v36 = vshrl.u32 %v159_v33, 23  ;;  %v60_v37 = vand.u32 8388607, %v53_v30  ;;  %vm54_vm1 = vcmp.le.f32.partialorder %v53_v30, 0.7853982 }
  0x15   :  { %v163_v40 = vand.u32 8388607, %v156_v34 }
  0x16   :  { %v539_v35 = vadd.s32 4294967169, %v57_v32  ;;  %v543_v39 = vadd.s32 4294967169, %v160_v36  ;;  %v61_v42 = vor.u32 8388608, %v60_v37 }
  0x17   :  { %v164_v49 = vor.u32 8388608, %v163_v40 }
  0x18   :  { %v63_v38 = vadd.s32 1, %v539_v35  ;;  %v166_v41 = vadd.s32 1, %v543_v39  ;;  %v664_v61 = vshll.u32 %v61_v42, 8 }
  0x19   :  { %v204_v35 = vshll.u32 %v164_v49, 8 }
  0x1a   :  { %vm64_vm2 = vcmp.gt.s32.totalorder %v63_v38, 0  ;;  %vm167_vm3 = vcmp.gt.s32.totalorder %v166_v41, 0 }
  0x1b   :  { %v65_v43 = vsel %vm64_vm2, %v63_v38, 0  ;;  %v168_v62 = vsel %vm167_vm3, %v166_v41, 0  ;;  %vm158_vm2 = vcmp.lt.s32.totalorder %v649_v28, 0  ;;  %vm157_vm3 = vcmp.le.f32.partialorder %v156_v34, 0.7853982 }
  0x1c   :  { %v577_v44 = vpop.eup %576  ;;  %v67_v45 = vand.u32 31, %v65_v43  ;;  %v66_v48 = vshrl.u32 %v65_v43, 5  ;;  %v169_v33 = vshrl.u32 %v168_v62, 5  ;;  %v170_v38 = vand.u32 31, %v168_v62 }
  0x1d   :  { %v660_v46 = vmul.f32 %v577_v44, %v42_v21  ;;  %v662_v47 = vmul.f32 %v577_v44, %v47_v22  ;;  %v579_v63 = vpop.eup %578 }
  0x1e   :  { %v68_v50 = vsub.s32 32, %v67_v45  ;;  %v70_v52 = vshll.u32 %v590_v51, %v67_v45  ;;  %v73_v54 = vshll.u32 %v591_v53, %v67_v45  ;;  %v76_v56 = vshll.u32 %v592_v55, %v67_v45 }
  0x1f   :  { %v79_v58 = vshll.u32 %v593_v57, %v67_v45  ;;  %v82_v60 = vshll.u32 %v594_v59, %v67_v45  ;;  %vm85_vm4 = vcmp.lt.s32.totalorder %v66_v48, 1  ;;  %vm86_vm5 = vcmp.lt.s32.totalorder %v66_v48, 2 }
  0x20   :  { %v69_v0 = vshrl.u32 %v590_v51, %v68_v50  ;;  %v71_v1 = vshrl.u32 %v591_v53, %v68_v50  ;;  %v74_v4 = vshrl.u32 %v592_v55, %v68_v50  ;;  %v77_v5 = vshrl.u32 %v593_v57, %v68_v50 }
  0x21   :  { %v80_v6 = vshrl.u32 %v594_v59, %v68_v50  ;;  %v83_v9 = vshrl.u32 %v595_v8, %v68_v50  ;;  %vm88_vm6 = vcmp.lt.s32.totalorder %v66_v48, 4  ;;  %vm87_vm7 = vcmp.lt.s32.totalorder %v66_v48, 3 }
  0x22   :  { %v72_v10 = vor.u32 %v71_v1, %v70_v52  ;;  %v75_v11 = vor.u32 %v74_v4, %v73_v54  ;;  %v78_v12 = vor.u32 %v77_v5, %v76_v56  ;;  %v667_v15 = vmul.f32 %v579_v63, %v43_v24 }
  0x23   :  { %v81_v13 = vor.u32 %v80_v6, %v79_v58  ;;  %v84_v14 = vor.u32 %v83_v9, %v82_v60  ;;  %v670_v29 = vmul.f32 %v579_v63, %v640_v25  ;;  %v171_v25 = vsub.s32 32, %v170_v38 }
  0x24   :  { %v89_v16 = vsel %vm85_vm4, %v69_v0, %v72_v10  ;;  %v90_v17 = vsel %vm88_vm6, %v78_v12, 2102212464  ;;  %v93_v18 = vsel %vm85_vm4, %v72_v10, %v75_v11  ;;  %v97_v19 = vsel %vm85_vm4, %v75_v11, %v78_v12 }
  0x25   :  { %v91_v21 = vsel %vm87_vm7, %v75_v11, %v90_v17  ;;  %v94_v22 = vsel %vm88_vm6, %v81_v13, 920167782  ;;  %v98_v27 = vsel %vm88_vm6, %v84_v14, 1326507024  ;;  %v173_v43 = vshll.u32 %v590_v51, %v170_v38 }
  0x26   :  { %v95_v31 = vsel %vm87_vm7, %v78_v12, %v94_v22  ;;  %v99_v32 = vsel %vm87_vm7, %v81_v13, %v98_v27  ;;  %v92_v36 = vsel %vm86_vm5, %v89_v16, %v91_v21  ;;  %v176_v44 = vshll.u32 %v591_v53, %v170_v38 }
  0x27   :  { %v96_v37 = vsel %vm86_vm5, %v93_v18, %v95_v31  ;;  %v100_v24 = vsel %vm86_vm5, %v97_v19, %v99_v32  ;;  %v179_v45 = vshll.u32 %v592_v55, %v170_v38  ;;  %v108_v49 = vmul.u32 %v664_v61, %v92_v36 }
  0x28   :  { %v676_v39 = vmul.u32.u64.low %v664_v61, %v100_v24  ;;  %v677_v40 = vmul.u32.u64.high %v664_v61, %v100_v24, %v676_v39  ;;  %v680_v41 = vmul.u32.u64.low %v664_v61, %v96_v37  ;;  %v681_v42 = vmul.u32.u64.high %v664_v61, %v96_v37, %v680_v41 }
  0x29   :  { %v182_v50 = vshll.u32 %v593_v57, %v170_v38  ;;  %v185_v52 = vshll.u32 %v594_v59, %v170_v38  ;;  %vm188_vm8 = vcmp.lt.s32.totalorder %v169_v33, 1  ;;  %v172_v48 = vshrl.u32 %v590_v51, %v171_v25 }
  0x2a   :  { %v174_v54 = vshrl.u32 %v591_v53, %v171_v25  ;;  %v177_v56 = vshrl.u32 %v592_v55, %v171_v25  ;;  %v180_v58 = vshrl.u32 %v593_v57, %v171_v25  ;;  %vm110_vm9 = vc.u32 %v677_v40, %v680_v41 }
  0x2b   :  { %v111_v60 = vadd.s32 1, %v681_v42  ;;  %v183_v62 = vshrl.u32 %v594_v59, %v171_v25  ;;  %vm189_vm10 = vcmp.lt.s32.totalorder %v169_v33, 2  ;;  %v186_v4 = vshrl.u32 %v595_v8, %v171_v25 }
  0x2c   :  { %v175_v63 = vor.u32 %v174_v54, %v173_v43  ;;  %v178_v0 = vor.u32 %v177_v56, %v176_v44  ;;  %v181_v1 = vor.u32 %v180_v58, %v179_v45  ;;  %vm190_vm11 = vcmp.lt.s32.totalorder %v169_v33, 3 }
  0x2d   :  { %v112_v5 = vsel %vm110_vm9, %v111_v60, %v681_v42  ;;  %v184_v61 = vor.u32 %v183_v62, %v182_v50  ;;  %vm191_vm12 = vcmp.lt.s32.totalorder %v169_v33, 4  ;;  %v187_v51 = vor.u32 %v186_v4, %v185_v52 }
  0x2e   :  { %v113_v6 = vadd.s32 %v112_v5, %v108_v49  ;;  %v192_v53 = vsel %vm188_vm8, %v172_v48, %v175_v63  ;;  %v193_v55 = vsel %vm191_vm12, %v181_v1, 2102212464  ;;  %v196_v9 = vsel %vm188_vm8, %v175_v63, %v178_v0 }
  0x2f   :  { %v194_v57 = vsel %vm190_vm11, %v178_v0, %v193_v55  ;;  %v197_v10 = vsel %vm191_vm12, %v184_v61, 920167782  ;;  %v200_v59 = vsel %vm188_vm8, %v178_v0, %v181_v1  ;;  %v201_v13 = vsel %vm191_vm12, %v187_v51, 1326507024 }
  0x30   :  { %v114_v11 = vadd.s32 536870912, %v113_v6  ;;  %v198_v12 = vsel %vm190_vm11, %v181_v1, %v197_v10  ;;  %v195_v8 = vsel %vm189_vm10, %v192_v53, %v194_v57  ;;  %v202_v16 = vsel %vm190_vm11, %v184_v61, %v201_v13 }
  0x31   :  { %v199_v14 = vsel %vm189_vm10, %v196_v9, %v198_v12  ;;  %v203_v18 = vsel %vm189_vm10, %v200_v59, %v202_v16  ;;  %v211_v32 = vmul.u32 %v204_v35, %v195_v8  ;;  %v109_v49 = vadd.s32 %v680_v41, %v677_v40 }
  0x32   :  { %v115_v17 = vshrl.u32 %v114_v11, 30  ;;  %v693_v19 = vmul.u32.u64.low %v204_v35, %v199_v14  ;;  %v694_v21 = vmul.u32.u64.high %v204_v35, %v199_v14, %v693_v19  ;;  %vm145_vm4 = vweird.f32 %v644_v26 }
  0x33   :  { %v696_v22 = vmul.u32.u64.low %v204_v35, %v203_v18  ;;  %v697_v27 = vmul.u32.u64.high %v204_v35, %v203_v18, %v696_v22  ;;  %vm467_vm5 = vcmp.le.f32.partialorder %v631_v20, 1.0 }
  0x34   :  { %v116_v31 = vshll.u32 %v115_v17, 30  ;;  %v214_v37 = vadd.s32 1, %v694_v21  ;;  %v139_v51 = vsub.s32 4, %v115_v17 }
  0x35   :  { %vm213_vm13 = vc.u32 %v697_v27, %v693_v19  ;;  %v212_v40 = vadd.s32 %v693_v19, %v697_v27  ;;  %v18_v19 = vand.u32 7, %v609_v2 }
  0x36   :  { %v117_v36 = vsub.s32 %v113_v6, %v116_v31  ;;  %v215_v38 = vsel %vm213_vm13, %v214_v37, %v694_v21  ;;  %v140_v59 = vsel %vm55_vm0, %v139_v51, %v115_v17  ;;  %vm248_vm13 = vweird.f32 %v649_v28 }
  0x37   :  { %v216_v39 = vadd.s32 %v215_v38, %v211_v32  ;;  %v142_v14 = vsel %vm54_vm1, 0, %v140_v59  ;;  %v709_v30 = vshra.s32 %v18_v19, 2  ;;  %v482_v59 = vsub.f32 0.0, %v670_v29 }
  0x38   :  { %v119_v24 = vsub.s32 0, %v117_v36  ;;  %v352_v27 = vadd.s32 3, %v142_v14 }
  0x39   :  { %v217_v33 = vadd.s32 536870912, %v216_v39  ;;  %v20_v2 = vand.u32 1, %v709_v30 }
  0x3a   :  { %v540_v42 = vmin.u32 %v119_v24, %v117_v36  ;;  %v353_v37 = vand.u32 3, %v352_v27 }
  0x3b   :  { %v218_v43 = vshrl.u32 %v217_v33, 30 }
  0x3c   :  { %v121_v25 = vclz %v540_v42  ;;  %v475_v42 = vsub.f32 0.0, %v660_v46  ;;  %vm358_vm7 = vcmp.eq.s32.totalorder %v353_v37, 2  ;;  %vm355_vm9 = vcmp.eq.s32.totalorder %v353_v37, 0 }
  0x3d   :  { %v219_v45 = vshll.u32 %v218_v43, 30  ;;  %v242_v32 = vsub.s32 4, %v218_v43  ;;  %vm354_vm11 = vcmp.lt.s32.totalorder %v353_v37, 2  ;;  %v481_v46 = vsub.f32 0.0, %v662_v47 }
  0x3e   :  { %v541_v44 = vadd.s32 4294967294, %v121_v25 }
  0x3f   :  { %v220_v35 = vsub.s32 %v216_v39, %v219_v45  ;;  %v243_v38 = vsel %vm158_vm2, %v242_v32, %v218_v43  ;;  %v715_v39 = vand.u32 1, %v18_v19 }
  0x40   :  { %vm542_vm14 = vcmp.lt.s32.totalorder %v541_v44, 0  ;;  %v245_v45 = vsel %vm157_vm3, 0, %v243_v38 }
  0x41   :  { %v124_v50 = vsel %vm542_vm14, 0, %v541_v44  ;;  %v222_v56 = vsub.s32 0, %v220_v35 }
  0x42   :  { %v125_v52 = vsub.s32 32, %v124_v50  ;;  %v126_v48 = vshll.u32 %v117_v36, %v124_v50  ;;  %v129_v54 = vsub.s32 4294967266, %v124_v50  ;;  %v146_v36 = vand.u32 3, %v142_v14 }
  0x43   :  { %v544_v62 = vmin.u32 %v222_v56, %v220_v35 }
  0x44   :  { %v127_v58 = vshrl.u32 %v109_v49, %v125_v52  ;;  %v130_v60 = vadd.s32 127, %v129_v54  ;;  %vm151_vm6 = vcmp.eq.s32.totalorder %v146_v36, 2  ;;  %vm148_vm8 = vcmp.eq.s32.totalorder %v146_v36, 0 }
  0x45   :  { %v224_v1 = vclz %v544_v62  ;;  %vm147_vm10 = vcmp.lt.s32.totalorder %v146_v36, 2  ;;  %v456_v52 = vadd.s32 3, %v245_v45 }
  0x46   :  { %v128_v63 = vor.u32 %v127_v58, %v126_v48  ;;  %v131_v0 = vshll.u32 %v130_v60, 23 }
  0x47   :  { %v545_v61 = vadd.s32 4294967294, %v224_v1  ;;  %v511_v1 = vxor.u32 %v715_v39, %v20_v2 }
  0x48   :  { %v132_v4 = vor.u32 4788187, %v131_v0  ;;  %v135_v5 = vcvt.s32.f32 %v128_v63  ;;  %v596_v63 = vmov 0.0  }
  0x49   :  { %vm546_vm15 = vcmp.lt.s32.totalorder %v545_v61, 0  ;;  %v555_v0 = vsel %vm467_vm5, 1.0, %v596_v63  ;;  %vm512_vm12 = vcmp.eq.s32.totalorder %v511_v1, 1  ;;  %vm489_vm5 = vcmp.eq.s32.totalorder %v715_v39, 0 }
  0x4a   :  { %v133_v6 = vand.u32 2147483647, %v132_v4  ;;  %v227_v53 = vsel %vm546_vm15, 0, %v545_v61  ;;  %v457_v61 = vand.u32 3, %v456_v52 }
  0x4b   :  { %v228_v55 = vsub.s32 32, %v227_v53  ;;  %v229_v57 = vshll.u32 %v220_v35, %v227_v53  ;;  %v232_v9 = vsub.s32 4294967266, %v227_v53 }
  0x4c   :  { %v136_v41 = vmul.f32 %v135_v5, %v133_v6  ;;  %v249_v6 = vand.u32 3, %v245_v45  ;;  %vm462_vm14 = vcmp.eq.s32.totalorder %v457_v61, 2 }
  0x4d   :  { %v230_v11 = vshrl.u32 %v212_v40, %v228_v55  ;;  %v233_v12 = vadd.s32 127, %v232_v9 }
  0x4e   :  { %v137_v10 = vxor.u32 2147483648, %v136_v41  ;;  %vm251_vm15 = vcmp.eq.s32.totalorder %v249_v6, 0 }
  0x4f   :  { %v231_v16 = vor.u32 %v230_v11, %v229_v57  ;;  %v234_v18 = vshll.u32 %v233_v12, 23 }
  0x50   :  { %v138_v13 = vsel %vm55_vm0, %v137_v10, %v136_v41  ;;  %vm254_vm0 = vcmp.eq.s32.totalorder %v249_v6, 2  ;;  %v476_v10 = vsub.f32 0.0, %v667_v15 }
  0x51   :  { %v141_v8 = vsel %vm54_vm1, %v644_v26, %v138_v13  ;;  %v235_v21 = vor.u32 4788187, %v234_v18  ;;  %v238_v22 = vcvt.s32.f32 %v231_v16  ;;  %vm459_vm1 = vcmp.eq.s32.totalorder %v457_v61, 0 }
  0x52   :  { %580 = vcosq.f32 %v141_v8 }
  0x53   :  { %582 = vsinq.f32 %v141_v8  ;;  %v236_v31 = vand.u32 2147483647, %v235_v21 }
  0x55   :  { %v239_v17 = vmul.f32 %v238_v22, %v236_v31 }
  0x57   :  { %v240_v24 = vxor.u32 2147483648, %v239_v17 }
  0x59   :  { %v241_v33 = vsel %vm158_vm2, %v240_v24, %v239_v17  ;;  %vm458_vm2 = vcmp.lt.s32.totalorder %v457_v61, 2 }
  0x5a   :  { %v244_v44 = vsel %vm157_vm3, %v649_v28, %v241_v33  ;;  %vm468_vm3 = vcmp.le.f32.partialorder %v636_v23, 1.0 }
  0x5b   :  { %584 = vcosq.f32 %v244_v44  ;;  %v556_v16 = vsel %vm468_vm3, 1.0, %v596_v63 }
  0x5c   :  { %v581_v25 = vpop.eup %580  ;;  %586 = vsinq.f32 %v244_v44 }
  0x5d   :  { %v583_v34 = vpop.eup %582  ;;  %v152_v43 = vxor.u32 2147483648, %v581_v25 }
  0x5e   :  { %v149_v49 = vxor.u32 2147483648, %v583_v34 }
  0x5f   :  { %v153_v50 = vsel %vm151_vm6, %v152_v43, %v583_v34  ;;  %v360_v35 = vsel %vm358_vm7, %v152_v43, %v583_v34  ;;  %vm517_vm6 = vcmp.eq.s32.totalorder %v715_v39, 1  ;;  %vm500_vm7 = vcmp.eq.s32.totalorder %v20_v2, 0 }
  0x60   :  { %v150_v48 = vsel %vm148_vm8, %v581_v25, %v149_v49  ;;  %v357_v54 = vsel %vm355_vm9, %v581_v25, %v149_v49 }
  0x61   :  { %v154_v56 = vsel %vm147_vm10, %v150_v48, %v153_v50  ;;  %v361_v58 = vsel %vm354_vm11, %v357_v54, %v360_v35 }
  0x62   :  { %v155_v60 = vsel %vm145_vm4, nan, %v154_v56  ;;  %v362_v62 = vsel %vm145_vm4, nan, %v361_v58  ;;  %vm250_vm4 = vcmp.lt.s32.totalorder %v249_v6, 2 }
  0x63   :  { %v473_v47 = vmul.f32 %v555_v0, %v155_v60  ;;  %v477_v4 = vmul.f32 %v475_v42, %v362_v62  ;;  %v483_v5 = vmul.f32 %v481_v46, %v362_v62 }
  0x65   :  { %v479_v51 = vmul.f32 %v555_v0, %v477_v4  ;;  %v585_v40 = vpop.eup %584  ;;  %v485_v57 = vmul.f32 %v555_v0, %v483_v5  ;;  %v522_v29 = vmul.f32 %v614_v3, %v473_v47 }
  0x66   :  { %v587_v41 = vpop.eup %586  ;;  %v255_v20 = vxor.u32 2147483648, %v585_v40 }
  0x67   :  { %v513_v26 = vsub.f32 0.0, %v479_v51  ;;  %v252_v53 = vxor.u32 2147483648, %v587_v41  ;;  %v518_v45 = vsub.f32 0.0, %v485_v57 }
  0x68   :  { %v464_v9 = vsel %vm462_vm14, %v255_v20, %v587_v41  ;;  %v256_v12 = vsel %vm254_vm0, %v255_v20, %v587_v41 }
  0x69   :  { %v515_v55 = vsel %vm512_vm12, %v479_v51, %v513_v26  ;;  %v253_v11 = vsel %vm251_vm15, %v585_v40, %v252_v53  ;;  %v461_v13 = vsel %vm459_vm1, %v585_v40, %v252_v53  ;;  %v520_v43 = vsel %vm517_vm6, %v485_v57, %v518_v45 }
  0x6a   :  { %v465_v8 = vsel %vm458_vm2, %v461_v13, %v464_v9  ;;  %v257_v18 = vsel %vm250_vm4, %v253_v11, %v256_v12 }
  0x6b   :  { %v466_v14 = vsel %vm248_vm13, nan, %v465_v8  ;;  %v258_v23 = vsel %vm248_vm13, nan, %v257_v18 }
  0x6c   :  { %v478_v19 = vmul.f32 %v476_v10, %v466_v14  ;;  %v484_v21 = vmul.f32 %v482_v59, %v466_v14  ;;  %v474_v31 = vmul.f32 %v556_v16, %v258_v23 }
  0x6e   :  { %v480_v22 = vmul.f32 %v556_v16, %v478_v19  ;;  %v486_v27 = vmul.f32 %v556_v16, %v484_v21  ;;  %v523_v38 = vmul.f32 %v622_v7, %v474_v31 }
  0x70   :  { %v514_v15 = vsub.f32 0.0, %v480_v22  ;;  %v519_v49 = vsub.f32 0.0, %v486_v27 }
  0x72   :  { %v516_v36 = vsel %vm512_vm12, %v480_v22, %v514_v15  ;;  %v521_v52 = vsel %vm517_vm6, %v486_v27, %v519_v49 }
  0x74   :  { %v495_v32 = vpop.permute.xlu1 %494  ;;  %v491_v17 = vpop.permute.xlu0 %490 }
  0x75   :  { %v498_v37 = vsel %vm489_vm5, %v491_v17, %v495_v32 }
  0x76   :  { %501 = vrot.lane.b32.xlu0 %v498_v37, %s597_s0  ;;  %v524_v24 = vmul.f32 %v515_v55, %v498_v37 }
  0x78   :  { %v526_v42 = vadd.f32 %v524_v24, %v522_v29  ;;  %v497_v33 = vpop.permute.xlu1 %496  ;;  %v493_v28 = vpop.permute.xlu0 %492 }
  0x79   :  { %v499_v25 = vsel %vm489_vm5, %v493_v28, %v497_v33 }
  0x7a   :  { %505 = vrot.lane.b32.xlu0 %v498_v37, %s598_s12  ;;  %503 = vrot.lane.b32.xlu1 %v499_v25, %s597_s0  ;;  %v525_v44 = vmul.f32 %v516_v36, %v499_v25 }
  0x7c   :  { %v527_v3 = vadd.f32 %v525_v44, %v523_v38 }
  0x7e   :  { %507 = vrot.lane.b32.xlu1 %v499_v25, %s598_s12 }
  0xe8   :  { %v502_v34 = vpop.permute.xlu0 %501 }
  0xec   :  { %v504_v7 = vpop.permute.xlu1 %503  ;;  %v506_v50 = vpop.permute.xlu0 %505 }
  0xed   :  { %v509_v35 = vsel %vm500_vm7, %v502_v34, %v506_v50 }
  0xee   :  { %v528_v46 = vmul.f32 %v520_v43, %v509_v35 }
  0xf0   :  { %v530_v48 = vadd.f32 %v528_v46, %v526_v42  ;;  %v508_v54 = vpop.permute.xlu1 %507 }
  0xf1   :  { %v510_v56 = vsel %vm500_vm7, %v504_v7, %v508_v54 }
  0xf2   :  { %532 = vst [vmem:[%s754_s1] sm:$0xff] %v530_v48  ;;  %v529_v58 = vmul.f32 %v521_v52, %v510_v56 }
  0xf4   :  { %v531_v60 = vadd.f32 %v529_v58, %v527_v3 }
  0xf6   :  { %533 = vst [vmem:[%s754_s1 + $0x8] sm:$0xff] %v531_v60 }

</bundles_post_ra>
